<compile_context>
chip_gen: v5e
topology: v5e:2x2
jax: 0.10.0
libtpu: 0.0.40
codegen_flags: <defaults>
</compile_context>

<pallas_src>
import jax
import jax.numpy as jnp
from jax.experimental import pallas as pl
from jax.experimental.pallas import tpu as pltpu


# ---------------------------------------------------------------------------
# Tiling / dispatch helpers
# ---------------------------------------------------------------------------

def _round8(n):
    return max(8, (n // 8) * 8)


def _choose_batch_tile(batch, bytes_per_row, *, max_tile=1024,
                       vmem_budget_bytes=16 << 20, resident_bytes=0):
    """Largest multiple-of-8 batch tile whose per-tile working set
    (bytes_per_row already includes any double-buffering factors) fits the
    VMEM budget after subtracting grid-resident weights."""
    budget = vmem_budget_bytes - resident_bytes
    if budget <= 0:
        raise ValueError(
            "Resident weights exceed the VMEM budget; use the folded path "
            "(fold_ffn_params + ffn_forward_folded) or stream/tile the weights.")
    tile = _round8(min(max_tile, ((batch + 7) // 8) * 8))
    # Keep >=4 grid steps when the batch is big enough, so the x DMA pipelines
    # and (on v7x) both TensorCores get work.
    if batch >= 32:
        tile = min(tile, _round8(batch // 4))
    while tile > 8 and tile * bytes_per_row > budget:
        tile = _round8(tile // 2)
    return tile


def _batch_dimension_semantics():
    """CORE_PARALLEL on v7x (2 TCs/chip); PARALLEL elsewhere."""
    try:
        kind = jax.devices()[0].device_kind.lower()
        if "v7" in kind:
            return (pltpu.CORE_PARALLEL,)
    except Exception:
        pass
    return (pltpu.PARALLEL,)


_COMPILER_PARAMS = dict(vmem_limit_bytes=32 << 20)   # safe on v5e/v6e/v7x


# ---------------------------------------------------------------------------
# Primary path: folded affine kernel (out = x @ w_eff + b_eff)
# ---------------------------------------------------------------------------

def _affine_kernel(x_ref, w_ref, b_ref, o_ref):
    # x_ref: (TM, D) batch tile (f32 or bf16-streamed)
    # w_ref: (1, D)  grid-resident folded weight row, (w1 @ w2)^T
    # b_ref: (1, 1)  SMEM scalar, b1 @ w2 + b2
    # o_ref: (TM, 1)
    x = x_ref[...].astype(jnp.float32)     # upcast right after load (v5e-safe)
    w = w_ref[...].astype(jnp.float32)
    acc = jnp.sum(x * w, axis=-1, keepdims=True)   # VPU mul + XLU lane reduce
    o_ref[...] = (acc + b_ref[0, 0]).astype(o_ref.dtype)


def fold_ffn_params(w1, b1, w2, b2, *, stream_dtype=jnp.float32):
    """One-time algebraic fold (do this when weights are created, not per call):
    out = x @ w_eff + b_eff with w_eff = w1 @ w2, b_eff = b1 @ w2 + b2."""
    d = w1.shape[0]
    w_eff = (w1 @ w2).reshape(1, d).astype(stream_dtype)
    b_eff = (b1 @ w2 + b2).reshape(1, 1).astype(jnp.float32)
    return w_eff, b_eff


def ffn_forward_folded(x, w_eff, b_eff):
    """FFN forward using pre-folded params: a single batch-tiled affine kernel."""
    batch, d = x.shape
    x_isz = jnp.dtype(x.dtype).itemsize
    bytes_per_row = 2 * d * x_isz + 2 * 4          # double-buffered x + out col
    resident = 2 * d * jnp.dtype(w_eff.dtype).itemsize
    tile = _choose_batch_tile(batch, bytes_per_row, resident_bytes=resident)
    grid = (pl.cdiv(batch, tile),)                 # no jnp.pad copy of x

    return pl.pallas_call(
        _affine_kernel,
        out_shape=jax.ShapeDtypeStruct((batch, 1), jnp.float32),
        grid=grid,
        in_specs=[
            pl.BlockSpec((tile, d), lambda i: (i, 0)),
            pl.BlockSpec((1, d), lambda i: (0, 0)),             # resident row
            pl.BlockSpec(memory_space=pltpu.MemorySpace.SMEM),   # scalar bias
        ],
        out_specs=pl.BlockSpec((tile, 1), lambda i: (i, 0)),
        compiler_params=pltpu.CompilerParams(
            dimension_semantics=_batch_dimension_semantics(),
            **_COMPILER_PARAMS),
    )(x, w_eff, b_eff)


def ffn_forward(x, w1, b1, w2, b2, *, stream_dtype=None):
    """Convenience wrapper: fold then run.  Prefer folding once with
    fold_ffn_params() and calling ffn_forward_folded() in a real loop."""
    sd = x.dtype if stream_dtype is None else stream_dtype
    w_eff, b_eff = fold_ffn_params(w1, b1, w2, b2, stream_dtype=sd)
    return ffn_forward_folded(x.astype(sd), w_eff, b_eff)


# ---------------------------------------------------------------------------
# Alternative path: fused two-layer kernel (layer structure kept in-kernel)
# ---------------------------------------------------------------------------

def _ffn_fused_kernel(x_ref, w1_ref, b1_ref, w2_ref, b2_ref, o_ref):
    # x_ref: (TM, D), w1_ref: (D, H) [both possibly bf16], b1_ref: (1, H) f32,
    # w2_ref: (1, H) f32, b2_ref: (1, 1) SMEM f32, o_ref: (TM, 1) f32.
    h = jnp.dot(x_ref[...], w1_ref[...],
                preferred_element_type=jnp.float32)          # MXU (bf16 native)
    h = h + b1_ref[...]
    # Second linear has N=1: VPU multiply + XLU lane reduce, not an MXU matmul.
    out = jnp.sum(h * w2_ref[...].astype(jnp.float32), axis=-1, keepdims=True)
    o_ref[...] = (out + b2_ref[0, 0]).astype(o_ref.dtype)


def ffn_forward_fused(x, w1, b1, w2, b2, *, stream_dtype=None):
    """Fused two-layer FFN forward (both linears inside one kernel)."""
    batch, d = x.shape
    h_dim = w1.shape[1]
    if stream_dtype is not None:
        x = x.astype(stream_dtype)
        w1 = w1.astype(stream_dtype)
    b1_row = b1.reshape(1, h_dim).astype(jnp.float32)
    w2_row = w2.reshape(1, h_dim).astype(jnp.float32)
    b2_s = jnp.asarray(b2, jnp.float32).reshape(1, 1)

    x_isz = jnp.dtype(x.dtype).itemsize
    w_isz = jnp.dtype(w1.dtype).itemsize
    # Resident weights are double-buffered by the pipeline: w1 + b1 + w2 rows.
    resident = 2 * (d * h_dim * w_isz + 2 * h_dim * 4)
    # Per batch row: double-buffered x tile + f32 hidden intermediate + out.
    bytes_per_row = 2 * d * x_isz + h_dim * 4 + 2 * 4
    tile = _choose_batch_tile(batch, bytes_per_row, resident_bytes=resident)
    grid = (pl.cdiv(batch, tile),)

    return pl.pallas_call(
        _ffn_fused_kernel,
        out_shape=jax.ShapeDtypeStruct((batch, 1), jnp.float32),
        grid=grid,
        in_specs=[
            pl.BlockSpec((tile, d), lambda i: (i, 0)),
            pl.BlockSpec((d, h_dim), lambda i: (0, 0)),          # resident
            pl.BlockSpec((1, h_dim), lambda i: (0, 0)),          # resident
            pl.BlockSpec((1, h_dim), lambda i: (0, 0)),          # resident
            pl.BlockSpec(memory_space=pltpu.MemorySpace.SMEM),   # scalar bias
        ],
        out_specs=pl.BlockSpec((tile, 1), lambda i: (i, 0)),
        compiler_params=pltpu.CompilerParams(
            dimension_semantics=_batch_dimension_semantics(),
            **_COMPILER_PARAMS),
    )(x, w1, b1_row, w2_row, b2_s)


# ---------------------------------------------------------------------------
# Parameter init (mimics nn.Linear's uniform(-1/sqrt(fan_in), +1/sqrt(fan_in)))
# ---------------------------------------------------------------------------

def init_ffn_params(key, input_dim, hidden_dim):
    k1, k2, k3, k4 = jax.random.split(key, 4)
    bound1 = 1.0 / jnp.sqrt(jnp.float32(input_dim))
    bound2 = 1.0 / jnp.sqrt(jnp.float32(hidden_dim))
    w1 = jax.random.uniform(k1, (input_dim, hidden_dim), jnp.float32,
                            -bound1, bound1)
    b1 = jax.random.uniform(k2, (1, hidden_dim), jnp.float32, -bound1, bound1)
    w2 = jax.random.uniform(k3, (hidden_dim, 1), jnp.float32, -bound2, bound2)
    b2 = jax.random.uniform(k4, (1, 1), jnp.float32, -bound2, bound2)
    return w1, b1, w2, b2


if __name__ == "__main__":
    batch, input_dim, hidden_dim = 8, 16, 32

    key = jax.random.PRNGKey(0)
    kx, kp = jax.random.split(key)
    x = jax.random.normal(kx, (batch, input_dim), jnp.float32)
    w1, b1, w2, b2 = init_ffn_params(kp, input_dim, hidden_dim)

    # Pure-JAX reference of the original module's math.
    ref = (x @ w1 + b1) @ w2 + b2

    # Fold once (hoisted out of the per-call path), then run the f32 paths.
    w_eff, b_eff = fold_ffn_params(w1, b1, w2, b2)
    out_folded = jax.block_until_ready(ffn_forward_folded(x, w_eff, b_eff))
    out_fused = jax.block_until_ready(ffn_forward_fused(x, w1, b1, w2, b2))
    # bf16-streamed variant (bandwidth optimization): looser tolerance.
    out_bf16 = jax.block_until_ready(
        ffn_forward(x, w1, b1, w2, b2, stream_dtype=jnp.bfloat16))

    assert out_folded.shape == (batch, 1)
    assert out_fused.shape == (batch, 1)
    assert jnp.allclose(out_folded, ref, atol=1e-5, rtol=1e-5)
    assert jnp.allclose(out_fused, ref, atol=1e-5, rtol=1e-5)
    assert jnp.allclose(out_bf16, ref, atol=2e-2, rtol=2e-2)

    print("KERNEL_OK")
</pallas_src>

<mosaic_0001>
module attributes {stable_mosaic.version = 11 : i64} {
  func.func @_affine_kernel(%arg0: i32, %arg1: memref<8x16xf32, #tpu.memory_space<vmem>>, %arg2: memref<1x16xf32, #tpu.memory_space<vmem>>, %arg3: memref<1x1xf32, #tpu.memory_space<smem>>, %arg4: memref<8x1xf32, #tpu.memory_space<vmem>>) attributes {dimension_semantics = [#tpu.dimension_semantics<parallel>], iteration_bounds = array<i64: 1>, scalar_prefetch = 0 : i64, scratch_operands = 0 : i64, tpu.core_type = #tpu.core_type<tc>, window_params = [{transform_indices = @transform_0, window_bounds = array<i64: 8, 16>}, {pipeline_mode = #tpu.pipeline_mode<synchronous>, transform_indices = @transform_1, window_bounds = array<i64: 1, 16>}, {transform_indices = @transform_2, window_bounds = array<i64: 1, 1>}, {transform_indices = @transform_3, window_bounds = array<i64: 8, 1>}]} {
    %c0 = arith.constant 0 : index
    %c0_0 = arith.constant 0 : index
    %0 = vector.load %arg1[%c0, %c0_0] : memref<8x16xf32, #tpu.memory_space<vmem>>, vector<8x16xf32>
    %c0_1 = arith.constant 0 : index
    %c0_2 = arith.constant 0 : index
    %1 = vector.load %arg2[%c0_1, %c0_2] : memref<1x16xf32, #tpu.memory_space<vmem>>, vector<1x16xf32>
    %2 = vector.broadcast %1 : vector<1x16xf32> to vector<8x16xf32>
    %3 = arith.mulf %0, %2 : vector<8x16xf32>
    %cst = arith.constant dense<0.000000e+00> : vector<8xf32>
    %4 = vector.multi_reduction <add>, %3, %cst [1] : vector<8x16xf32> to vector<8xf32>
    %5 = vector.shape_cast %4 : vector<8xf32> to vector<8x1xf32>
    %c0_3 = arith.constant 0 : index
    %c0_4 = arith.constant 0 : index
    %6 = memref.load %arg3[%c0_3, %c0_4] : memref<1x1xf32, #tpu.memory_space<smem>>
    %7 = vector.broadcast %6 : f32 to vector<8x1xf32>
    %8 = arith.addf %5, %7 : vector<8x1xf32>
    %c0_5 = arith.constant 0 : index
    %c0_6 = arith.constant 0 : index
    %9 = vector.load %arg4[%c0_5, %c0_6] : memref<8x1xf32, #tpu.memory_space<vmem>>, vector<8x1xf32>
    tpu.vector_store %arg4[%c0_5, %c0_6], %8 {strides = array<i32>} : memref<8x1xf32, #tpu.memory_space<vmem>>, vector<8x1xf32>,
    return
  }
  func.func @transform_0(%arg0: i32) -> (i32, i32) {
    %c0_i32 = arith.constant 0 : i32
    %c0_i32_0 = arith.constant 0 : i32
    return %arg0, %c0_i32 : i32, i32
  }
  func.func @transform_1(%arg0: i32) -> (i32, i32) {
    %c0_i32 = arith.constant 0 : i32
    %c0_i32_0 = arith.constant 0 : i32
    %c0_i32_1 = arith.constant 0 : i32
    return %c0_i32, %c0_i32_0 : i32, i32
  }
  func.func @transform_2(%arg0: i32) -> (i32, i32) {
    %c0_i32 = arith.constant 0 : i32
    %c0_i32_0 = arith.constant 0 : i32
    %c0_i32_1 = arith.constant 0 : i32
    return %c0_i32, %c0_i32_0 : i32, i32
  }
  func.func @transform_3(%arg0: i32) -> (i32, i32) {
    %c0_i32 = arith.constant 0 : i32
    %c0_i32_0 = arith.constant 0 : i32
    return %arg0, %c0_i32 : i32, i32
  }
}

</mosaic_0001>

<bundles_post_ra>
// kernel: tpu_custom_call.1
= control target key start
LH: loop header
LB: loop body
LE: loop exit
PB: predicated region body
PF: predicated region fallthrough
CT: control target
= control target key end

     0   :  { %9 = vsyncpa [#allocation4], 0  ;;  %s77_s15 = smov [#allocation3]   ;;  %s110_s0 = inlined_call_operand.hbm [shape: f32[8,16], index: 0, kind: input, shape index: {}]   ;;  %s111_s1 = inlined_call_operand.vmem [shape: f32[1,16], index: 1, kind: input, shape index: {}]   ;;  %s112_s2 = inlined_call_operand.<no memory space> [shape: f32[1,1], index: 2, kind: input, shape index: {}]   ;;  %s113_s3 = inlined_call_operand.vmem [shape: f32[8,1], index: 3, kind: output, shape index: {}]  }
   0x1   :  { %s15_s14 = sshll.u32 %s110_s0, 4  ;;  %s17_s16 = sshll.u32 %s77_s15, 4  ;;  %s16_s14 = int_to_ptr.hbm [resolvable:$true] %s15_s14  ;;  %s18_s16 = int_to_ptr.vmem [resolvable:$true] %s17_s16 }
   0x2   :  { %20 = dma.hbm_to_vmem [thread:$0]  %s16_s14, 128, %s18_s16, [#allocation4]  }
   0x3   :  { %75 = dma.done.wait [#allocation4], 128  }
   0x4   :  { %76 = vsyncadd [#allocation4], 4294967168  ;;  %v29_v0 = vld [vmem:[#allocation3] sm:$0xff]  ;;  %vm35_vm0 = vcmask 130048   ;;  %v40_v4 = vstv %s112_s2  ;;  %vm42_vm1 = vcmask 7168  }
   0x5   :  { %v50_v1 = vld [vmem:[%s111_s1] ss:$0 sm:$0xff] }
   0x6   :  { %v34_v2 = vmul.f32 %v50_v1, %v29_v0 }
   0x8   :  { %v36_v3 = vsel %vm35_vm0, %v34_v2, 0.0 }
   0x9   :  { %37 = vadd.xlane.f32.xlu0 %v36_v3 }
  0x7c   :  { %v38_v5 = vpop.xlane.xlu0 %37 }
  0x7d   :  { %v41_v6 = vadd.f32 %v40_v4, %v38_v5 }
  0x7f   :  { %43 = vst.msk [vmem:[%s113_s3] sm:$0xff] %vm42_vm1, %v41_v6 }
  0x80   :  { %48 = vsyncpa [#allocation4], 1 }

</bundles_post_ra>
